<compile_context>
chip_gen: v7x
topology: tpu7x:2x2x1
jax: 0.10.0
libtpu: 0.0.40
codegen_flags: <defaults>
</compile_context>

<pallas_src>
import functools

import jax
import jax.numpy as jnp
from jax import lax
from jax.experimental import pallas as pl
from jax.experimental.pallas import tpu as pltpu


def _round_down(x, m):
    return max(m, (x // m) * m)


def _round_up(x, m):
    return max(m, ((x + m - 1) // m) * m)


@functools.lru_cache(maxsize=1)
def _vmem_config():
    """Returns (io_vmem_budget_bytes, vmem_limit_bytes), generation-aware."""
    cap = None
    try:
        cap = int(pltpu.get_tpu_info().vmem_capacity_bytes)
    except Exception:
        cap = None
    if cap is not None and cap >= 96 * 1024 * 1024:
        # v5e / v6e: 128 MiB physical VMEM per TensorCore.
        return 32 * 1024 * 1024, 96 * 1024 * 1024
    # v7x (64 MiB physical) or unknown: stay conservative.
    return 10 * 1024 * 1024, 48 * 1024 * 1024


# Per-element VMEM cost estimate: 2x double-buffered IO (in + out) plus
# in-kernel f32 temporaries (x_f32, products, pre-cast output).
def _bytes_per_element(itemsize):
    return 4 * itemsize + 12


# ---------------------------------------------------------------------------
# channels_last: normalize each row of a (rows, C) slab over C (lane axis).
# ---------------------------------------------------------------------------
def _ln_last_kernel(x_ref, w_ref, b_ref, o_ref, *, eps):
    # x_ref: (TM, C); w_ref / b_ref: (1, C)
    x = x_ref[...].astype(jnp.float32)
    w = w_ref[...].astype(jnp.float32)
    b = b_ref[...].astype(jnp.float32)
    m1 = jnp.mean(x, axis=-1, keepdims=True)           # (TM, 1)
    m2 = jnp.mean(x * x, axis=-1, keepdims=True)       # (TM, 1)
    var = m2 - m1 * m1                                  # biased variance (torch)
    inv = lax.rsqrt(var + eps)                          # EUP slot; cheap
    s = inv * w                                         # (TM, C)
    shift = b - m1 * s                                  # (TM, C)
    o_ref[...] = (x * s + shift).astype(o_ref.dtype)    # single FMA per element


def _ln_channels_last(x2d, weight, bias, eps):
    rows, c = x2d.shape
    io_budget, vmem_limit = _vmem_config()
    itemsize = jnp.dtype(x2d.dtype).itemsize

    bytes_per_row = c * _bytes_per_element(itemsize)
    tm = min(8192, io_budget // max(bytes_per_row, 1))
    tm = _round_down(tm, 8)
    # Guarantee >= 2 grid steps when possible so the v7x megacore splits work.
    if rows > 8:
        tm = min(tm, _round_up(pl.cdiv(rows, 2), 8))
    tm = min(tm, _round_up(rows, 8))
    grid = (pl.cdiv(rows, tm),)  # ragged last block clipped; rows independent

    kernel = functools.partial(_ln_last_kernel, eps=eps)
    return pl.pallas_call(
        kernel,
        out_shape=jax.ShapeDtypeStruct((rows, c), x2d.dtype),
        grid=grid,
        in_specs=[
            pl.BlockSpec((tm, c), lambda i: (i, 0)),
            pl.BlockSpec((1, c), lambda i: (0, 0)),
            pl.BlockSpec((1, c), lambda i: (0, 0)),
        ],
        out_specs=pl.BlockSpec((tm, c), lambda i: (i, 0)),
        compiler_params=pltpu.CompilerParams(
            dimension_semantics=("parallel",),
            vmem_limit_bytes=vmem_limit,
        ),
    )(x2d, weight.reshape(1, c), bias.reshape(1, c))


# ---------------------------------------------------------------------------
# channels_first: normalize each spatial position of (B, C, H*W) over the
# C (sublane) axis, keeping H*W lane-dense.  No transposes.
# ---------------------------------------------------------------------------
def _ln_first_kernel(x_ref, w_ref, b_ref, o_ref, *, eps):
    # x_ref: (1, C, T); w_ref / b_ref: (C, 1)
    x = x_ref[0].astype(jnp.float32)                    # (C, T)
    w = w_ref[...].astype(jnp.float32)                  # (C, 1)
    b = b_ref[...].astype(jnp.float32)                  # (C, 1)
    m1 = jnp.mean(x, axis=0, keepdims=True)             # (1, T) cross-sublane (XLU)
    m2 = jnp.mean(x * x, axis=0, keepdims=True)         # (1, T)
    var = m2 - m1 * m1                                   # biased variance (torch)
    inv = lax.rsqrt(var + eps)                           # (1, T)
    s = inv * w                                           # (C, T)
    shift = b - m1 * s                                    # (C, T)
    o_ref[0] = (x * s + shift).astype(o_ref.dtype)


def _ln_channels_first(x, weight, bias, eps):
    bsz, c, h, w = x.shape
    hw = h * w
    x3d = x.reshape(bsz, c, hw)  # contiguous view; no HBM transpose pass
    io_budget, vmem_limit = _vmem_config()
    itemsize = jnp.dtype(x.dtype).itemsize

    if hw <= 128:
        t = hw  # block equals full last dim -> always a legal layout
    else:
        bytes_per_lane = c * _bytes_per_element(itemsize)
        t = min(16384, io_budget // max(bytes_per_lane, 1))
        t = _round_down(t, 128)
        if bsz == 1:
            # Ensure >= 2 total grid steps so both v7x TensorCores get work.
            t = min(t, _round_up(pl.cdiv(hw, 2), 128))
        t = max(t, 128)
        t = min(t, _round_up(hw, 128))
    grid = (bsz, pl.cdiv(hw, t))  # ragged last HW block clipped; lanes independent

    kernel = functools.partial(_ln_first_kernel, eps=eps)
    out = pl.pallas_call(
        kernel,
        out_shape=jax.ShapeDtypeStruct((bsz, c, hw), x.dtype),
        grid=grid,
        in_specs=[
            pl.BlockSpec((1, c, t), lambda i, j: (i, 0, j)),
            pl.BlockSpec((c, 1), lambda i, j: (0, 0)),
            pl.BlockSpec((c, 1), lambda i, j: (0, 0)),
        ],
        out_specs=pl.BlockSpec((1, c, t), lambda i, j: (i, 0, j)),
        compiler_params=pltpu.CompilerParams(
            dimension_semantics=("parallel", "parallel"),
            vmem_limit_bytes=vmem_limit,
        ),
    )(x3d, weight.reshape(c, 1), bias.reshape(c, 1))
    return out.reshape(bsz, c, h, w)


# ---------------------------------------------------------------------------
# Module mirror
# ---------------------------------------------------------------------------
class LayerNormPallas:
    """Mirror of the PyTorch LayerNorm module (ConvNeXt variant)."""

    def __init__(self, normalized_shape, eps=1e-6, data_format="channels_last"):
        if data_format not in ("channels_last", "channels_first"):
            raise ValueError(f"not support data format '{data_format}'")
        self.weight = jnp.ones((normalized_shape,), dtype=jnp.float32)
        self.bias = jnp.zeros((normalized_shape,), dtype=jnp.float32)
        self.eps = eps
        self.data_format = data_format
        self.normalized_shape = (normalized_shape,)

    def __call__(self, x):
        c = self.normalized_shape[0]
        if self.data_format == "channels_last":
            assert x.shape[-1] == c
            lead = x.shape[:-1]
            y = _ln_channels_last(x.reshape(-1, c), self.weight, self.bias, self.eps)
            return y.reshape(*lead, c)
        else:  # channels_first, x: (B, C, H, W)
            assert x.shape[1] == c
            return _ln_channels_first(x, self.weight, self.bias, self.eps)


# ---------------------------------------------------------------------------
# References + test
# ---------------------------------------------------------------------------
def _reference_channels_first(x, weight, bias, eps):
    mean = jnp.mean(x, axis=1, keepdims=True)
    var = jnp.mean((x - mean) ** 2, axis=1, keepdims=True)
    xn = (x - mean) / jnp.sqrt(var + eps)
    return weight[:, None, None] * xn + bias[:, None, None]


def _reference_channels_last(x, weight, bias, eps):
    mean = jnp.mean(x, axis=-1, keepdims=True)
    var = jnp.mean((x - mean) ** 2, axis=-1, keepdims=True)
    xn = (x - mean) / jnp.sqrt(var + eps)
    return xn * weight + bias


if __name__ == "__main__":
    key = jax.random.PRNGKey(0)
    k1, k2 = jax.random.split(key)

    # channels_first: NCHW input (B=2, C=4, H=16, W=16)
    B, C, H, W = 2, 4, 16, 16
    x_cf = jax.random.normal(k1, (B, C, H, W), dtype=jnp.float32)
    ln_cf = LayerNormPallas(C, eps=1e-6, data_format="channels_first")
    y_cf = jax.block_until_ready(ln_cf(x_cf))
    ref_cf = _reference_channels_first(x_cf, ln_cf.weight, ln_cf.bias, ln_cf.eps)
    assert y_cf.shape == (B, C, H, W)
    assert jnp.allclose(y_cf, ref_cf, atol=1e-3, rtol=1e-3)

    # channels_last: NHWC input (B=2, H=16, W=16, C=32)
    C2 = 32
    x_cl = jax.random.normal(k2, (B, H, W, C2), dtype=jnp.float32)
    ln_cl = LayerNormPallas(C2, eps=1e-6, data_format="channels_last")
    y_cl = jax.block_until_ready(ln_cl(x_cl))
    ref_cl = _reference_channels_last(x_cl, ln_cl.weight, ln_cl.bias, ln_cl.eps)
    assert y_cl.shape == (B, H, W, C2)
    assert jnp.allclose(y_cl, ref_cl, atol=1e-3, rtol=1e-3)

    print("KERNEL_OK")
</pallas_src>

<mosaic_0001>
module attributes {stable_mosaic.version = 11 : i64} {
  func.func @_ln_first_kernel(%arg0: i32, %arg1: i32, %arg2: memref<1x4x256xf32, #tpu.memory_space<vmem>>, %arg3: memref<4x1xf32, #tpu.memory_space<vmem>>, %arg4: memref<4x1xf32, #tpu.memory_space<vmem>>, %arg5: memref<1x4x256xf32, #tpu.memory_space<vmem>>) attributes {dimension_semantics = [#tpu.dimension_semantics<parallel>, #tpu.dimension_semantics<parallel>], iteration_bounds = array<i64: 2, 1>, scalar_prefetch = 0 : i64, scratch_operands = 0 : i64, tpu.core_type = #tpu.core_type<tc>, window_params = [{transform_indices = @transform_0, window_bounds = array<i64: 1, 4, 256>}, {pipeline_mode = #tpu.pipeline_mode<synchronous>, transform_indices = @transform_1, window_bounds = array<i64: 4, 1>}, {pipeline_mode = #tpu.pipeline_mode<synchronous>, transform_indices = @transform_2, window_bounds = array<i64: 4, 1>}, {transform_indices = @transform_3, window_bounds = array<i64: 1, 4, 256>}]} {
    %c0 = arith.constant 0 : index
    %c0_0 = arith.constant 0 : index
    %c0_1 = arith.constant 0 : index
    %0 = vector.load %arg2[%c0, %c0_0, %c0_1] : memref<1x4x256xf32, #tpu.memory_space<vmem>>, vector<1x4x256xf32>
    %1 = vector.shape_cast %0 : vector<1x4x256xf32> to vector<4x256xf32>
    %c0_2 = arith.constant 0 : index
    %c0_3 = arith.constant 0 : index
    %2 = vector.load %arg3[%c0_2, %c0_3] : memref<4x1xf32, #tpu.memory_space<vmem>>, vector<4x1xf32>
    %c0_4 = arith.constant 0 : index
    %c0_5 = arith.constant 0 : index
    %3 = vector.load %arg4[%c0_4, %c0_5] : memref<4x1xf32, #tpu.memory_space<vmem>>, vector<4x1xf32>
    %cst = arith.constant dense<0.000000e+00> : vector<256xf32>
    %4 = vector.multi_reduction <add>, %1, %cst [0] : vector<4x256xf32> to vector<256xf32>
    %5 = vector.shape_cast %4 : vector<256xf32> to vector<1x256xf32>
    %cst_6 = arith.constant 4.000000e+00 : f32
    %6 = vector.broadcast %cst_6 : f32 to vector<1x256xf32>
    %7 = arith.divf %5, %6 : vector<1x256xf32>
    %8 = arith.mulf %1, %1 : vector<4x256xf32>
    %cst_7 = arith.constant dense<0.000000e+00> : vector<256xf32>
    %9 = vector.multi_reduction <add>, %8, %cst_7 [0] : vector<4x256xf32> to vector<256xf32>
    %10 = vector.shape_cast %9 : vector<256xf32> to vector<1x256xf32>
    %cst_8 = arith.constant 4.000000e+00 : f32
    %11 = vector.broadcast %cst_8 : f32 to vector<1x256xf32>
    %12 = arith.divf %10, %11 : vector<1x256xf32>
    %13 = arith.mulf %7, %7 : vector<1x256xf32>
    %14 = arith.subf %12, %13 : vector<1x256xf32>
    %cst_9 = arith.constant 9.99999997E-7 : f32
    %15 = vector.broadcast %cst_9 : f32 to vector<1x256xf32>
    %16 = arith.addf %14, %15 : vector<1x256xf32>
    %17 = math.rsqrt %16 : vector<1x256xf32>
    %18 = vector.broadcast %17 : vector<1x256xf32> to vector<4x256xf32>
    %19 = vector.broadcast %2 : vector<4x1xf32> to vector<4x256xf32>
    %20 = arith.mulf %18, %19 : vector<4x256xf32>
    %21 = vector.broadcast %7 : vector<1x256xf32> to vector<4x256xf32>
    %22 = arith.mulf %21, %20 : vector<4x256xf32>
    %23 = vector.broadcast %3 : vector<4x1xf32> to vector<4x256xf32>
    %24 = arith.subf %23, %22 : vector<4x256xf32>
    %25 = arith.mulf %1, %20 : vector<4x256xf32>
    %26 = arith.addf %25, %24 : vector<4x256xf32>
    %c0_10 = arith.constant 0 : index
    %c0_11 = arith.constant 0 : index
    %c0_12 = arith.constant 0 : index
    %27 = vector.load %arg5[%c0_10, %c0_11, %c0_12] : memref<1x4x256xf32, #tpu.memory_space<vmem>>, vector<1x4x256xf32>
    %28 = vector.shape_cast %27 : vector<1x4x256xf32> to vector<4x256xf32>
    %29 = vector.shape_cast %26 : vector<4x256xf32> to vector<1x4x256xf32>
    tpu.vector_store %arg5[%c0_10, %c0_11, %c0_12], %29 {strides = array<i32>} : memref<1x4x256xf32, #tpu.memory_space<vmem>>, vector<1x4x256xf32>,
    return
  }
  func.func @transform_0(%arg0: i32, %arg1: i32) -> (i32, i32, i32) {
    %c0_i32 = arith.constant 0 : i32
    %c0_i32_0 = arith.constant 0 : i32
    return %arg0, %c0_i32, %arg1 : i32, i32, i32
  }
  func.func @transform_1(%arg0: i32, %arg1: i32) -> (i32, i32) {
    %c0_i32 = arith.constant 0 : i32
    %c0_i32_0 = arith.constant 0 : i32
    %c0_i32_1 = arith.constant 0 : i32
    return %c0_i32, %c0_i32_0 : i32, i32
  }
  func.func @transform_2(%arg0: i32, %arg1: i32) -> (i32, i32) {
    %c0_i32 = arith.constant 0 : i32
    %c0_i32_0 = arith.constant 0 : i32
    %c0_i32_1 = arith.constant 0 : i32
    return %c0_i32, %c0_i32_0 : i32, i32
  }
  func.func @transform_3(%arg0: i32, %arg1: i32) -> (i32, i32, i32) {
    %c0_i32 = arith.constant 0 : i32
    %c0_i32_0 = arith.constant 0 : i32
    return %arg0, %c0_i32, %arg1 : i32, i32, i32
  }
}

</mosaic_0001>

<bundles_post_ra>
// kernel: tpu_custom_call.1
= control target key start
LH: loop header
LB: loop body
LE: loop exit
PB: predicated region body
PF: predicated region fallthrough
CT: control target
= control target key end

     0   :  { %8 = vsyncpa [#allocation3], 0  ;;  %s792_s0 = inlined_call_operand.hbm [shape: f32[2,4,256], index: 0, kind: input, shape index: {}]   ;;  %s793_s1 = inlined_call_operand.vmem [shape: f32[4,1], index: 1, kind: input, shape index: {}]   ;;  %s794_s2 = inlined_call_operand.vmem [shape: f32[4,1], index: 2, kind: input, shape index: {}]   ;;  %s795_s3 = inlined_call_operand.hbm [shape: f32[2,4,256], index: 3, kind: output, shape index: {}]  }
   0x1   :  { %10 = vsyncpa [#allocation3 + $0x1], 0 }
   0x2   :  { %11 = vsyncpa [#allocation4], 0 }
   0x3   :  { %13 = vsyncpa [#allocation4 + $0x1], 0  ;;  %s610_s12 = smov 0   ;;  %s612_s13 = smov 0  }
   0x4   :  { %s614_s14 = smov 0   ;;  %s616_s15 = smov 0  }
   0x5   :  { %s618_s16 = smov 0   ;;  %s620_s17 = smov 0  }
   0x6 LB: > { %s387_s18 = sadd.s32 4294967295, %s585_s17   ;;  %s388_s19 = sadd.s32 4294967294, %s585_s17   ;;  %s585_s17 = sphi %s620_s17, %s19_s17   ;;  %s581_s16 = sphi %s618_s16, %s811_s16   ;;  %s577_s15 = sphi %s616_s15, %s810_s15   ;;  %s573_s14 = sphi %s614_s14, %s809_s14   ;;  %s569_s13 = sphi %s612_s13, %s808_s13   ;;  %s565_s12 = sphi %s610_s12, %s807_s12  }
   0x7   : > { %s31_s20 = sadd.s32 1, %s581_s16  ;;  %s40_s21 = sadd.s32 1, %s573_s14 }
   0x8   : > { %p33_p0 = scmp.ge.s32.totalorder %s31_s20, 2  ;;  %p47_p1 = scmp.ne.s32.totalorder %s573_s14, %s569_s13 }
   0x9   : > { %p48_p2 = scmp.eq.s32.totalorder %s585_s17, 0  ;;  %p53_p3 = scmp.ne.s32.totalorder %s569_s13, %s565_s12 }
   0xa   : > { %s813_s20 = smov (%p33_p0, %s31_s20), 0  ;;  %p54_p5 = scmp.eq.s32.totalorder %s387_s18, 0 }
   0xb   : > { %p651_p4 = por %p48_p2, %p47_p1  ;;  %s35_s23 = ssub.s32 %s581_s16, %s813_s20 }
   0xc   : > { %p121_p6 = scmp.eq.s32.totalorder %s387_s18, 1  ;;  %p38_p7 = scmp.eq.s32.totalorder %s35_s23, 0 }
   0xd   : > { %p657_p8 = por %p54_p5, %p53_p3  ;;  %p127_p10 = scmp.eq.s32.totalorder %s388_s19, 1 }
   0xe   : > { %p661_p9 = por %p121_p6, %p47_p1  ;;  %p416_p13 = scmp.lt.s32.totalorder %s585_s17, 2 }
   0xf   : > { %s666_s26 = scalar_select %p38_p7, %s573_s14, %s40_s21  }
  0x10   : > { %s799_s25 = scalar_select %p661_p9, 1, 0 }
  0x11   : > { %p668_p11 = por %p127_p10, %p53_p3  ;;  %s153_s28 = sand.u32 1, %s573_s14  }
  0x12   : > { %s391_s29 = sshll.u32 %s153_s28, 3  ;;  %s402_s30 = sshll.u32 %s581_s16, 7 }
  0x13   : > { %s800_s27 = scalar_select %p668_p11, 1, 0 }
  0x14   : > { %s679_s6 = scalar_lea.hbm %s792_s0, %s402_s30  ;;  %s157_s7 = scalar_lea.vmem [#allocation2], %s391_s29 }
  0x15   : > { %s167_s8 = sshll.u32 %s157_s7, 4  ;;  %p685_p0 = pnand %p416_p13, %p651_p4  ;;  %s681_s8 = int_to_ptr.vmem [resolvable:$true] %s167_s8 }
  0x16   : > { %s154_s10 = scalar_lea.sflag [#allocation3], %s153_s28  ;;  %s473_s11 = scalar_lea.hbm %s679_s6, 128 }
  0x17   : > { %p474_p3 = scmp.ne.s32.totalorder %s679_s6, %s473_s11  ;;  %p475_p5 = pneg %p685_p0 }
  0x18   : > { %s478_s21 = scalar_lea.hbm %s792_s0, 256  ;;  %p479_p4 = scmp.lt.u32.totalorder %s679_s6, %s792_s0 }
  0x19   : > { %p476_p6 = pnand %p475_p5, %p474_p3  ;;  %p480_p10 = scmp.lt.u32.totalorder %s478_s21, %s473_s11 }
  0x1a   : > { %p482_p12 = scmp.lt.u32.totalorder %s473_s11, %s679_s6 }
  0x1b   : > { %p477_p7 = pneg %p476_p6  ;;  %p481_p13 = por %p480_p10, %p479_p4 }
  0x1d   : > { %p483_p1 = por %p482_p12, %p481_p13 }
  0x1f   : > { %p484_p2 = pnand %p483_p1, %p477_p7 }
  0x21   : > { %487 = shalt.err (!%p484_p2)
}
  0x22   : > { %s488_s28 = scalar_lea.vmem %s681_s8, 128  ;;  %s587_s29 = smov [#allocation2]  }
  0x23   : > { %p489_p3 = scmp.ne.s32.totalorder %s681_s8, %s488_s28  ;;  %s493_s30 = sshll.u32 %s587_s29, 4  ;;  %s494_s30 = int_to_ptr.vmem [resolvable:$false] %s493_s30 }
  0x24   : > { %s495_s4 = scalar_lea.vmem %s494_s30, 256  ;;  %p496_p9 = scmp.lt.s32.totalorder %s681_s8, %s494_s30 }
  0x25   : > { %p491_p6 = pnand %p489_p3, %p475_p5  ;;  %p497_p4 = scmp.lt.s32.totalorder %s495_s4, %s488_s28 }
  0x27   : > { %p492_p11 = pneg %p491_p6  ;;  %p498_p10 = por %p497_p4, %p496_p9 }
  0x29   : > { %p499_p12 = pnand %p498_p10, %p492_p11 }
  0x2b   : > { %502 = shalt.err (!%p499_p12)
}
  0x2c   : > { %411 = dma.hbm_to_vmem [thread:$0]  (!%p685_p0), %s679_s6, 128, %s681_s8, %s154_s10  }
  0x2d   : > { %p802_p1 = scmp.lt.s32.totalorder %s585_s17, 3  ;;  %p803_p2 = scmp.ge.s32.totalorder %s585_s17, 1 }
  0x2f   : > { %p173_p5 = pnand %p803_p2, %p802_p1 }
  0x30   : > { %s721_s5 = sand.u32 (!%p173_p5), 1, %s569_s13  }
  0x31   : > { %176 = sbr.rel (%p173_p5) target bundleno = 211 (0xd3), region = 32  ;;  %s395_s7 = sshll.u32 (!%p173_p5), %s721_s5, 3 }
  0x32   : > { %s179_s11 = scalar_lea.sflag (!%p173_p5), [#allocation3], %s721_s5  ;;  %s182_s9 = scalar_lea.vmem (!%p173_p5), [#allocation2], %s395_s7 }
  0x38   : > { %556 = dma.done.wait (%p657_p8), %s179_s11, 128  }
  0x39   : > { %558 = vsyncadd (%p657_p8), %s179_s11, 4294967168  ;;  %v588_v0 = vmov 0   ;;  %v208_v1 = vld [vmem:[%s793_s1] sm:$0xf]  ;;  %vm213_vm0 = vcmask 1043456   ;;  %s403_s24 = sshll.u32 %s577_s15, 7 }
  0x3a   : > { %467 = vset.pattern.permute.xlu0 %v588_v0  ;;  %v209_v2 = vld [vmem:[%s794_s2] sm:$0xf]  ;;  %s204_s19 = scalar_lea.vmem [#allocation5], %s395_s7  ;;  %s743_s28 = scalar_lea.hbm %s795_s3, %s403_s24 }
  0x3b   : > { %261 = vperm.xlu0 %467, %v208_v1   ;;  %v207_v3 = vld [vmem:[%s182_s9] sm:$0xff]  ;;  %s303_s21 = sshll.u32 %s204_s19, 4  ;;  %s287_s29 = scalar_lea.sflag [#allocation4], %s721_s5  ;;  %s745_s21 = int_to_ptr.vmem [resolvable:$true] %s303_s21 }
  0x3c   : > { %v211_v4 = vcombine.high %v207_v3, %v207_v3  ;;  %v231_v5 = vmul.f32 %v207_v3, %v207_v3  ;;  %v214_v6 = vsel %vm213_vm0, %v207_v3, 0.0  ;;  %s503_s30 = scalar_lea.vmem %s745_s21, 128  ;;  %p804_p9 = scmp.ne.s32.totalorder %s799_s25, 0 }
  0x3d   : > { %v215_v9 = vrot.slane %v214_v6, 4  ;;  %p504_p8 = scmp.ne.s32.totalorder %s745_s21, %s503_s30  ;;  %s589_s15 = smov [#allocation5]  }
  0x3e   : > { %v221_v7 = vsel %vm213_vm0, %v211_v4, 0.0  ;;  %v233_v8 = vcombine.high %v231_v5, %v231_v5  ;;  %v235_v11 = vsel %vm213_vm0, %v231_v5, 0.0  ;;  %s507_s4 = sshll.u32 %s589_s15, 4  ;;  %s508_s4 = int_to_ptr.vmem [resolvable:$false] %s507_s4 }
  0x3f   : > { %270 = vperm.xlu0 %467, %v209_v2   ;;  %v222_v10 = vrot.slane %v221_v7, 4  ;;  %v216_v13 = vadd.f32 %v215_v9, %v214_v6  ;;  %v236_v14 = vrot.slane %v235_v11, 4  ;;  %p505_p11 = pnand %p504_p8, %p804_p9  ;;  %s509_s7 = scalar_lea.vmem %s508_s4, 256 }
  0x40   : > { %v242_v12 = vsel %vm213_vm0, %v233_v8, 0.0  ;;  %p510_p7 = scmp.lt.s32.totalorder %s745_s21, %s508_s4  ;;  %p511_p13 = scmp.lt.s32.totalorder %s509_s7, %s503_s30 }
  0x41   : > { %v223_v15 = vadd.f32 %v222_v10, %v221_v7  ;;  %v243_v16 = vrot.slane %v242_v12, 4  ;;  %v217_v17 = vrot.slane %v216_v13, 2  ;;  %v237_v18 = vadd.f32 %v236_v14, %v235_v11  ;;  %p506_p0 = pneg %p505_p11 }
  0x42   : > { %p512_p3 = por %p511_p13, %p510_p7 }
  0x43   : > { %v224_v19 = vrot.slane %v223_v15, 2  ;;  %v244_v20 = vadd.f32 %v243_v16, %v242_v12  ;;  %v218_v21 = vadd.f32 %v217_v17, %v216_v13  ;;  %v238_v22 = vrot.slane %v237_v18, 2 }
  0x44   : > { %p513_p6 = pnand %p512_p3, %p506_p0 }
  0x45   : > { %v225_v23 = vadd.f32 %v224_v19, %v223_v15  ;;  %v245_v24 = vrot.slane %v244_v20, 2  ;;  %v219_v25 = vrot.slane %v218_v21, 1  ;;  %v239_v26 = vadd.f32 %v238_v22, %v237_v18 }
  0x47   : > { %v226_v27 = vrot.slane %v225_v23, 1  ;;  %v246_v28 = vadd.f32 %v245_v24, %v244_v20  ;;  %v220_v29 = vadd.f32 %v219_v25, %v218_v21  ;;  %v240_v30 = vrot.slane %v239_v26, 1 }
  0x49   : > { %v227_v31 = vadd.f32 %v226_v27, %v225_v23  ;;  %v247_v32 = vrot.slane %v246_v28, 1  ;;  %v229_v33 = vmul.f32 0.25, %v220_v29  ;;  %v241_v34 = vadd.f32 %v240_v30, %v239_v26 }
  0x4b   : > { %v230_v35 = vmul.f32 0.25, %v227_v31  ;;  %v248_v36 = vadd.f32 %v247_v32, %v246_v28  ;;  %v249_v37 = vmul.f32 0.25, %v241_v34  ;;  %v251_v38 = vmul.f32 %v229_v33, %v229_v33 }
  0x4d   : > { %v250_v39 = vmul.f32 0.25, %v248_v36  ;;  %v252_v40 = vmul.f32 %v230_v35, %v230_v35  ;;  %v253_v41 = vsub.f32 %v249_v37, %v251_v38 }
  0x4f   : > { %v254_v42 = vsub.f32 %v250_v39, %v252_v40  ;;  %v255_v43 = vadd.f32 1e-06, %v253_v41 }
  0x51   : > { %v256_v44 = vadd.f32 1e-06, %v254_v42  ;;  %469 = vrsqrt.f32 %v255_v43 }
  0x53   : > { %471 = vrsqrt.f32 %v256_v44 }
  0x5b   : > { %v470_v45 = vpop.eup %469 }
  0x5d   : > { %v472_v46 = vpop.eup %471 }
  0xba   : > { %v262_v47 = vpop.permute.xlu0 %261 }
  0xbb   : > { %v264_v48 = vmul.f32 %v470_v45, %v262_v47  ;;  %v265_v49 = vmul.f32 %v472_v46, %v262_v47 }
  0xbd   : > { %v277_v50 = vcombine.low %v264_v48, %v265_v49  ;;  %v266_v51 = vmul.f32 %v264_v48, %v229_v33  ;;  %v267_v52 = vmul.f32 %v265_v49, %v230_v35 }
  0xbe   : > { %v271_v53 = vpop.permute.xlu0 %270 }
  0xbf   : > { %v273_v54 = vsub.f32 %v271_v53, %v266_v51  ;;  %v274_v55 = vsub.f32 %v271_v53, %v267_v52  ;;  %v279_v56 = vmul.f32 %v277_v50, %v207_v3 }
  0xc1   : > { %v282_v57 = vcombine.low %v273_v54, %v274_v55 }
  0xc3   : > { %v284_v58 = vadd.f32 %v282_v57, %v279_v56 }
  0xc5   : > { %285 = vst [vmem:[%s204_s19] sm:$0xff] %v284_v58 }
  0xc6   : > { %516 = shalt.err (!%p513_p6)
}
  0xc7   : > { %s517_s5 = scalar_lea.hbm %s743_s28, 128  ;;  %s521_s6 = scalar_lea.hbm %s795_s3, 256 }
  0xc8   : > { %p518_p4 = scmp.ne.s32.totalorder %s743_s28, %s517_s5  ;;  %p522_p1 = scmp.lt.u32.totalorder %s743_s28, %s795_s3 }
  0xc9   : > { %p523_p2 = scmp.lt.u32.totalorder %s521_s6, %s517_s5  ;;  %p525_p8 = scmp.lt.u32.totalorder %s517_s5, %s743_s28 }
  0xca   : > { %p519_p10 = pnand %p518_p4, %p804_p9 }
  0xcb   : > { %p524_p5 = por %p523_p2, %p522_p1 }
  0xcc   : > { %p520_p12 = pneg %p519_p10 }
  0xcd   : > { %p526_p11 = por %p525_p8, %p524_p5 }
  0xcf   : > { %p527_p0 = pnand %p526_p11, %p520_p12 }
  0xd1   : > { %530 = shalt.err (!%p527_p0)
}
  0xd2   : > { %406 = dma.vmem_to_hbm [thread:$0]  (%p804_p9), %s745_s21, 128, %s743_s28, %s287_s29  }
  0xd3 PF: > { %s315_s18 = sand.u32 1, %s565_s12   ;;  %p805_p7 = scmp.ne.s32.totalorder %s800_s27, 0 }
  0xd4   : > { %p806_p13 = scmp.ge.s32.totalorder %s585_s17, 2  ;;  %s316_s24 = scalar_lea.sflag [#allocation4], %s315_s18 }
  0xd6   : > { %p413_p3 = pnand %p806_p13, %p805_p7 }
  0xd8   : > { %560 = dma.done.wait (!%p413_p3), %s316_s24, 128  }
  0xd9   : > { %562 = vsyncadd (!%p413_p3), %s316_s24, 4294967168  ;;  %s19_s17 = sadd.s32 1, %s585_s17   ;;  %s807_s12 = smov %s569_s13 }
  0xda   : > { %p16_p6 = scmp.ge.s32.totalorder %s19_s17, 4   ;;  %s808_s13 = smov %s573_s14 }
  0xdb   : > { %s809_s14 = smov %s666_s26  ;;  %s810_s15 = smov %s581_s16 }
  0xdc   : > { %s811_s16 = smov %s813_s20  ;;  %18 = sbr.rel (!%p16_p6) target bundleno = 6 (0x6), region = 77 }
  0xe3   :  { %321 = vsyncpa [#allocation3], 1 }
  0xe4   :  { %323 = vsyncpa [#allocation3 + $0x1], 1 }
  0xe5   :  { %324 = vsyncpa [#allocation4], 1 }
  0xe6   :  { %326 = vsyncpa [#allocation4 + $0x1], 1 }

</bundles_post_ra>
